<compile_context>
chip_gen: v5e
topology: v5e:2x2
jax: 0.10.0
libtpu: 0.0.40
codegen_flags: <defaults>
</compile_context>

<pallas_src>
import jax
import jax.numpy as jnp
from jax.experimental import pallas as pl
from jax.experimental.pallas import tpu as pltpu

DISC_PAD = 128  # lane-dense width for the 1-wide discriminator output


# ---------------------------------------------------------------------------
# Fused GAN forward kernel (per batch tile):
#   fake      = tanh(relu(z @ gW1 + gb1) @ gW2 + gb2)        (kept in VMEM)
#   disc_fake = relu(fake @ dW1 + db1) @ dW2p + db2p          (128-lane padded)
#   disc_real = relu(x    @ dW1 + db1) @ dW2p + db2p          (128-lane padded)
# ---------------------------------------------------------------------------
def _gan_fused_kernel(z_ref, x_ref,
                      gw1_ref, gb1_ref, gw2_ref, gb2_ref,
                      dw1_ref, db1_ref, dw2_ref, db2_ref,
                      fake_ref, dfake_ref, dreal_ref):
    # ---- generator ----
    h = jnp.dot(z_ref[...], gw1_ref[...], preferred_element_type=jnp.float32) + gb1_ref[...]
    h = jnp.maximum(h, 0.0)                                   # ReLU in f32
    g = jnp.dot(h.astype(jnp.bfloat16), gw2_ref[...],
                preferred_element_type=jnp.float32) + gb2_ref[...]
    fake = jnp.tanh(g)                                        # tanh in f32 (EUP)
    fake_ref[...] = fake.astype(fake_ref.dtype)

    # ---- discriminator (shared resident weights, applied to fake AND real) ----
    def disc(v_bf16):
        hd = jnp.dot(v_bf16, dw1_ref[...], preferred_element_type=jnp.float32) + db1_ref[...]
        hd = jnp.maximum(hd, 0.0)
        return jnp.dot(hd.astype(jnp.bfloat16), dw2_ref[...],
                       preferred_element_type=jnp.float32) + db2_ref[...]

    dfake_ref[...] = disc(fake.astype(jnp.bfloat16)).astype(dfake_ref.dtype)
    dreal_ref[...] = disc(x_ref[...]).astype(dreal_ref.dtype)


def _pick_batch_tile(batch, max_tb=512):
    """Largest batch tile (multiple of 8, <= max_tb) that divides the batch."""
    if batch <= max_tb:
        return batch
    for tb in range(max_tb - max_tb % 8, 7, -8):
        if batch % tb == 0:
            return tb
    return batch  # fallback: single tile


def gan_fused_forward(z, x, params):
    """One pallas_call computing fake, disc(fake), disc(real) together."""
    B, emb = x.shape
    z_dim = z.shape[1]
    g_hid = params["g_w1"].shape[1]
    d_hid = params["d_w1"].shape[1]
    tb = _pick_batch_tile(B)
    grid = (pl.cdiv(B, tb),)

    fake, dfake_p, dreal_p = pl.pallas_call(
        _gan_fused_kernel,
        out_shape=(
            jax.ShapeDtypeStruct((B, emb), jnp.float32),
            jax.ShapeDtypeStruct((B, DISC_PAD), jnp.float32),
            jax.ShapeDtypeStruct((B, DISC_PAD), jnp.float32),
        ),
        grid_spec=pltpu.PrefetchScalarGridSpec(
            num_scalar_prefetch=0,
            grid=grid,
            in_specs=[
                pl.BlockSpec((tb, z_dim), lambda i: (i, 0)),       # z tile
                pl.BlockSpec((tb, emb), lambda i: (i, 0)),         # x tile
                pl.BlockSpec((z_dim, g_hid), lambda i: (0, 0)),    # g_w1 (resident)
                pl.BlockSpec((1, g_hid), lambda i: (0, 0)),        # g_b1
                pl.BlockSpec((g_hid, emb), lambda i: (0, 0)),      # g_w2 (resident)
                pl.BlockSpec((1, emb), lambda i: (0, 0)),          # g_b2
                pl.BlockSpec((emb, d_hid), lambda i: (0, 0)),      # d_w1 (resident)
                pl.BlockSpec((1, d_hid), lambda i: (0, 0)),        # d_b1
                pl.BlockSpec((d_hid, DISC_PAD), lambda i: (0, 0)), # d_w2 (lane-padded)
                pl.BlockSpec((1, DISC_PAD), lambda i: (0, 0)),     # d_b2 (lane-padded)
            ],
            out_specs=[
                pl.BlockSpec((tb, emb), lambda i: (i, 0)),         # fake
                pl.BlockSpec((tb, DISC_PAD), lambda i: (i, 0)),    # disc_fake (padded)
                pl.BlockSpec((tb, DISC_PAD), lambda i: (i, 0)),    # disc_real (padded)
            ],
        ),
        compiler_params=pltpu.CompilerParams(
            dimension_semantics=("parallel",),   # batch axis -> both TCs on v7x
        ),
    )(z, x,
      params["g_w1"], params["g_b1"], params["g_w2"], params["g_b2"],
      params["d_w1"], params["d_b1"], params["d_w2p"], params["d_b2p"])

    # slice the real (1-wide) critic score out of the lane-dense padded output
    return fake, dfake_p[:, :1], dreal_p[:, :1]


# ---------------------------------------------------------------------------
# Deterministic parameter init (synthetic weights, no checkpoint load)
# ---------------------------------------------------------------------------
def init_gan_params(key, *, z_dim, emb_dim, g_hidden, d_hidden):
    ks = jax.random.split(key, 8)
    scale = 0.1
    f32 = jnp.float32
    g_w1 = scale * jax.random.normal(ks[0], (z_dim, g_hidden), f32)
    g_b1 = scale * jax.random.normal(ks[1], (1, g_hidden), f32)
    g_w2 = scale * jax.random.normal(ks[2], (g_hidden, emb_dim), f32)
    g_b2 = scale * jax.random.normal(ks[3], (1, emb_dim), f32)
    d_w1 = scale * jax.random.normal(ks[4], (emb_dim, d_hidden), f32)
    d_b1 = scale * jax.random.normal(ks[5], (1, d_hidden), f32)
    d_w2 = scale * jax.random.normal(ks[6], (d_hidden, 1), f32)
    d_b2 = scale * jax.random.normal(ks[7], (1, 1), f32)
    # lane-dense discriminator head: zero-pad the 1-wide output to DISC_PAD lanes
    d_w2p = jnp.zeros((d_hidden, DISC_PAD), f32).at[:, :1].set(d_w2)
    d_b2p = jnp.zeros((1, DISC_PAD), f32).at[:, :1].set(d_b2)
    return {
        "z_dim": z_dim,
        # matmul weights stored in bf16 (MXU operands); biases stay f32
        "g_w1": g_w1.astype(jnp.bfloat16), "g_b1": g_b1,
        "g_w2": g_w2.astype(jnp.bfloat16), "g_b2": g_b2,
        "d_w1": d_w1.astype(jnp.bfloat16), "d_b1": d_b1,
        "d_w2p": d_w2p.astype(jnp.bfloat16), "d_b2p": d_b2p,
    }


# ---------------------------------------------------------------------------
# GAN.forward(x) -> {'fake', 'disc_fake', 'disc_real'}
# ---------------------------------------------------------------------------
def gan_forward(x, params, noise_key):
    batch_size, _ = x.shape
    # generate_random_noise_vector: z ~ N(0, 1), float32 (sampled in JAX glue).
    # TODO(synk): z could be drawn in-kernel via pltpu.prng_seed/prng_random_bits to save
    # one (B, z_dim) HBM round-trip; kept in the wrapper for exact reference checking.
    z = jax.random.normal(noise_key, (batch_size, params["z_dim"]), dtype=jnp.float32)
    fake, disc_fake, disc_real = gan_fused_forward(
        z.astype(jnp.bfloat16), x.astype(jnp.bfloat16), params)
    # TODO(synk): calculate_gradient_penalty uses torch.autograd.grad; not part of
    # forward(), so it is intentionally not implemented as a kernel here.
    return {"fake": fake, "disc_fake": disc_fake, "disc_real": disc_real}


if __name__ == "__main__":
    key = jax.random.PRNGKey(0)
    k_param, k_data, k_noise = jax.random.split(key, 3)

    batch_size = 8
    emb_dim = 32      # embedding_dim of the "real" data x
    z_dim = 16        # generator.input_dim
    g_hidden = 32
    d_hidden = 32

    params = init_gan_params(k_param, z_dim=z_dim, emb_dim=emb_dim,
                             g_hidden=g_hidden, d_hidden=d_hidden)
    x = jax.random.normal(k_data, (batch_size, emb_dim), dtype=jnp.float32)

    out = gan_forward(x, params, k_noise)
    jax.block_until_ready(out)

    assert out["fake"].shape == (batch_size, emb_dim)
    assert out["disc_fake"].shape == (batch_size, 1)
    assert out["disc_real"].shape == (batch_size, 1)

    # ---- pure-JAX reference with the same bf16-operand / f32-accumulate recipe ----
    def ref_mlp(v, w1, b1, w2, b2):
        h = jnp.maximum(
            jnp.dot(v.astype(jnp.bfloat16), w1, preferred_element_type=jnp.float32) + b1,
            0.0)
        return jnp.dot(h.astype(jnp.bfloat16), w2,
                       preferred_element_type=jnp.float32) + b2

    z_ref = jax.random.normal(k_noise, (batch_size, z_dim), dtype=jnp.float32)
    fake_ref = jnp.tanh(ref_mlp(z_ref, params["g_w1"], params["g_b1"],
                                params["g_w2"], params["g_b2"]))
    disc_real_ref = ref_mlp(x, params["d_w1"], params["d_b1"],
                            params["d_w2p"], params["d_b2p"])[:, :1]
    # check disc_fake against the reference discriminator applied to the kernel's own
    # `fake` so tiny generator rounding differences do not compound
    disc_fake_ref = ref_mlp(out["fake"], params["d_w1"], params["d_b1"],
                            params["d_w2p"], params["d_b2p"])[:, :1]

    assert jnp.allclose(out["fake"], fake_ref, atol=5e-3), "fake mismatch"
    assert jnp.allclose(out["disc_real"], disc_real_ref, atol=5e-3), "disc_real mismatch"
    assert jnp.allclose(out["disc_fake"], disc_fake_ref, atol=5e-3), "disc_fake mismatch"

    print("KERNEL_OK")
</pallas_src>

<mosaic_0001>
module attributes {stable_mosaic.version = 11 : i64} {
  func.func @_gan_fused_kernel(%arg0: i32, %arg1: memref<8x16xbf16, #tpu.memory_space<vmem>>, %arg2: memref<8x32xbf16, #tpu.memory_space<vmem>>, %arg3: memref<16x32xbf16, #tpu.memory_space<vmem>>, %arg4: memref<1x32xf32, #tpu.memory_space<vmem>>, %arg5: memref<32x32xbf16, #tpu.memory_space<vmem>>, %arg6: memref<1x32xf32, #tpu.memory_space<vmem>>, %arg7: memref<32x32xbf16, #tpu.memory_space<vmem>>, %arg8: memref<1x32xf32, #tpu.memory_space<vmem>>, %arg9: memref<32x128xbf16, #tpu.memory_space<vmem>>, %arg10: memref<1x128xf32, #tpu.memory_space<vmem>>, %arg11: memref<8x32xf32, #tpu.memory_space<vmem>>, %arg12: memref<8x128xf32, #tpu.memory_space<vmem>>, %arg13: memref<8x128xf32, #tpu.memory_space<vmem>>) attributes {dimension_semantics = [#tpu.dimension_semantics<parallel>], iteration_bounds = array<i64: 1>, scalar_prefetch = 0 : i64, scratch_operands = 0 : i64, tpu.core_type = #tpu.core_type<tc>, window_params = [{transform_indices = @transform_0, window_bounds = array<i64: 8, 16>}, {transform_indices = @transform_1, window_bounds = array<i64: 8, 32>}, {pipeline_mode = #tpu.pipeline_mode<synchronous>, transform_indices = @transform_2, window_bounds = array<i64: 16, 32>}, {pipeline_mode = #tpu.pipeline_mode<synchronous>, transform_indices = @transform_3, window_bounds = array<i64: 1, 32>}, {pipeline_mode = #tpu.pipeline_mode<synchronous>, transform_indices = @transform_4, window_bounds = array<i64: 32, 32>}, {pipeline_mode = #tpu.pipeline_mode<synchronous>, transform_indices = @transform_5, window_bounds = array<i64: 1, 32>}, {pipeline_mode = #tpu.pipeline_mode<synchronous>, transform_indices = @transform_6, window_bounds = array<i64: 32, 32>}, {pipeline_mode = #tpu.pipeline_mode<synchronous>, transform_indices = @transform_7, window_bounds = array<i64: 1, 32>}, {pipeline_mode = #tpu.pipeline_mode<synchronous>, transform_indices = @transform_8, window_bounds = array<i64: 32, 128>}, {pipeline_mode = #tpu.pipeline_mode<synchronous>, transform_indices = @transform_9, window_bounds = array<i64: 1, 128>}, {transform_indices = @transform_10, window_bounds = array<i64: 8, 32>}, {transform_indices = @transform_11, window_bounds = array<i64: 8, 128>}, {transform_indices = @transform_12, window_bounds = array<i64: 8, 128>}]} {
    %c0 = arith.constant 0 : index
    %c0_0 = arith.constant 0 : index
    %0 = vector.load %arg1[%c0, %c0_0] : memref<8x16xbf16, #tpu.memory_space<vmem>>, vector<8x16xbf16>
    %c0_1 = arith.constant 0 : index
    %c0_2 = arith.constant 0 : index
    %1 = vector.load %arg3[%c0_1, %c0_2] : memref<16x32xbf16, #tpu.memory_space<vmem>>, vector<16x32xbf16>
    %cst = arith.constant dense<0.000000e+00> : vector<8x32xf32>
    %2 = tpu.matmul %0, %1, %cst {dimension_numbers = #tpu.dot_dimension_numbers<[1], [0], [0], [1], [0, 0, 1, 1], [], []>} : vector<8x16xbf16>, vector<16x32xbf16>, vector<8x32xf32> -> vector<8x32xf32>
    %c0_3 = arith.constant 0 : index
    %c0_4 = arith.constant 0 : index
    %3 = vector.load %arg4[%c0_3, %c0_4] : memref<1x32xf32, #tpu.memory_space<vmem>>, vector<1x32xf32>
    %4 = vector.broadcast %3 : vector<1x32xf32> to vector<8x32xf32>
    %5 = arith.addf %2, %4 : vector<8x32xf32>
    %cst_5 = arith.constant 0.000000e+00 : f32
    %6 = vector.broadcast %cst_5 : f32 to vector<8x32xf32>
    %7 = arith.maximumf %5, %6 : vector<8x32xf32>
    %8 = arith.truncf %7 : vector<8x32xf32> to vector<8x32xbf16>
    %c0_6 = arith.constant 0 : index
    %c0_7 = arith.constant 0 : index
    %9 = vector.load %arg5[%c0_6, %c0_7] : memref<32x32xbf16, #tpu.memory_space<vmem>>, vector<32x32xbf16>
    %cst_8 = arith.constant dense<0.000000e+00> : vector<8x32xf32>
    %10 = tpu.matmul %8, %9, %cst_8 {dimension_numbers = #tpu.dot_dimension_numbers<[1], [0], [0], [1], [0, 0, 1, 1], [], []>} : vector<8x32xbf16>, vector<32x32xbf16>, vector<8x32xf32> -> vector<8x32xf32>
    %c0_9 = arith.constant 0 : index
    %c0_10 = arith.constant 0 : index
    %11 = vector.load %arg6[%c0_9, %c0_10] : memref<1x32xf32, #tpu.memory_space<vmem>>, vector<1x32xf32>
    %12 = vector.broadcast %11 : vector<1x32xf32> to vector<8x32xf32>
    %13 = arith.addf %10, %12 : vector<8x32xf32>
    %14 = math.tanh %13 : vector<8x32xf32>
    %c0_11 = arith.constant 0 : index
    %c0_12 = arith.constant 0 : index
    %15 = vector.load %arg11[%c0_11, %c0_12] : memref<8x32xf32, #tpu.memory_space<vmem>>, vector<8x32xf32>
    tpu.vector_store %arg11[%c0_11, %c0_12], %14 {strides = array<i32>} : memref<8x32xf32, #tpu.memory_space<vmem>>, vector<8x32xf32>,
    %16 = arith.truncf %14 : vector<8x32xf32> to vector<8x32xbf16>
    %c0_13 = arith.constant 0 : index
    %c0_14 = arith.constant 0 : index
    %17 = vector.load %arg7[%c0_13, %c0_14] : memref<32x32xbf16, #tpu.memory_space<vmem>>, vector<32x32xbf16>
    %cst_15 = arith.constant dense<0.000000e+00> : vector<8x32xf32>
    %18 = tpu.matmul %16, %17, %cst_15 {dimension_numbers = #tpu.dot_dimension_numbers<[1], [0], [0], [1], [0, 0, 1, 1], [], []>} : vector<8x32xbf16>, vector<32x32xbf16>, vector<8x32xf32> -> vector<8x32xf32>
    %c0_16 = arith.constant 0 : index
    %c0_17 = arith.constant 0 : index
    %19 = vector.load %arg8[%c0_16, %c0_17] : memref<1x32xf32, #tpu.memory_space<vmem>>, vector<1x32xf32>
    %20 = vector.broadcast %19 : vector<1x32xf32> to vector<8x32xf32>
    %21 = arith.addf %18, %20 : vector<8x32xf32>
    %cst_18 = arith.constant 0.000000e+00 : f32
    %22 = vector.broadcast %cst_18 : f32 to vector<8x32xf32>
    %23 = arith.maximumf %21, %22 : vector<8x32xf32>
    %24 = arith.truncf %23 : vector<8x32xf32> to vector<8x32xbf16>
    %c0_19 = arith.constant 0 : index
    %c0_20 = arith.constant 0 : index
    %25 = vector.load %arg9[%c0_19, %c0_20] : memref<32x128xbf16, #tpu.memory_space<vmem>>, vector<32x128xbf16>
    %cst_21 = arith.constant dense<0.000000e+00> : vector<8x128xf32>
    %26 = tpu.matmul %24, %25, %cst_21 {dimension_numbers = #tpu.dot_dimension_numbers<[1], [0], [0], [1], [0, 0, 1, 1], [], []>} : vector<8x32xbf16>, vector<32x128xbf16>, vector<8x128xf32> -> vector<8x128xf32>
    %c0_22 = arith.constant 0 : index
    %c0_23 = arith.constant 0 : index
    %27 = vector.load %arg10[%c0_22, %c0_23] : memref<1x128xf32, #tpu.memory_space<vmem>>, vector<1x128xf32>
    %28 = vector.broadcast %27 : vector<1x128xf32> to vector<8x128xf32>
    %29 = arith.addf %26, %28 : vector<8x128xf32>
    %c0_24 = arith.constant 0 : index
    %c0_25 = arith.constant 0 : index
    %30 = vector.load %arg12[%c0_24, %c0_25] : memref<8x128xf32, #tpu.memory_space<vmem>>, vector<8x128xf32>
    tpu.vector_store %arg12[%c0_24, %c0_25], %29 {strides = array<i32>} : memref<8x128xf32, #tpu.memory_space<vmem>>, vector<8x128xf32>,
    %c0_26 = arith.constant 0 : index
    %c0_27 = arith.constant 0 : index
    %31 = vector.load %arg2[%c0_26, %c0_27] : memref<8x32xbf16, #tpu.memory_space<vmem>>, vector<8x32xbf16>
    %c0_28 = arith.constant 0 : index
    %c0_29 = arith.constant 0 : index
    %32 = vector.load %arg7[%c0_28, %c0_29] : memref<32x32xbf16, #tpu.memory_space<vmem>>, vector<32x32xbf16>
    %cst_30 = arith.constant dense<0.000000e+00> : vector<8x32xf32>
    %33 = tpu.matmul %31, %32, %cst_30 {dimension_numbers = #tpu.dot_dimension_numbers<[1], [0], [0], [1], [0, 0, 1, 1], [], []>} : vector<8x32xbf16>, vector<32x32xbf16>, vector<8x32xf32> -> vector<8x32xf32>
    %c0_31 = arith.constant 0 : index
    %c0_32 = arith.constant 0 : index
    %34 = vector.load %arg8[%c0_31, %c0_32] : memref<1x32xf32, #tpu.memory_space<vmem>>, vector<1x32xf32>
    %35 = vector.broadcast %34 : vector<1x32xf32> to vector<8x32xf32>
    %36 = arith.addf %33, %35 : vector<8x32xf32>
    %cst_33 = arith.constant 0.000000e+00 : f32
    %37 = vector.broadcast %cst_33 : f32 to vector<8x32xf32>
    %38 = arith.maximumf %36, %37 : vector<8x32xf32>
    %39 = arith.truncf %38 : vector<8x32xf32> to vector<8x32xbf16>
    %c0_34 = arith.constant 0 : index
    %c0_35 = arith.constant 0 : index
    %40 = vector.load %arg9[%c0_34, %c0_35] : memref<32x128xbf16, #tpu.memory_space<vmem>>, vector<32x128xbf16>
    %cst_36 = arith.constant dense<0.000000e+00> : vector<8x128xf32>
    %41 = tpu.matmul %39, %40, %cst_36 {dimension_numbers = #tpu.dot_dimension_numbers<[1], [0], [0], [1], [0, 0, 1, 1], [], []>} : vector<8x32xbf16>, vector<32x128xbf16>, vector<8x128xf32> -> vector<8x128xf32>
    %c0_37 = arith.constant 0 : index
    %c0_38 = arith.constant 0 : index
    %42 = vector.load %arg10[%c0_37, %c0_38] : memref<1x128xf32, #tpu.memory_space<vmem>>, vector<1x128xf32>
    %43 = vector.broadcast %42 : vector<1x128xf32> to vector<8x128xf32>
    %44 = arith.addf %41, %43 : vector<8x128xf32>
    %c0_39 = arith.constant 0 : index
    %c0_40 = arith.constant 0 : index
    %45 = vector.load %arg13[%c0_39, %c0_40] : memref<8x128xf32, #tpu.memory_space<vmem>>, vector<8x128xf32>
    tpu.vector_store %arg13[%c0_39, %c0_40], %44 {strides = array<i32>} : memref<8x128xf32, #tpu.memory_space<vmem>>, vector<8x128xf32>,
    return
  }
  func.func @transform_0(%arg0: i32) -> (i32, i32) {
    %c0_i32 = arith.constant 0 : i32
    %c0_i32_0 = arith.constant 0 : i32
    return %arg0, %c0_i32 : i32, i32
  }
  func.func @transform_1(%arg0: i32) -> (i32, i32) {
    %c0_i32 = arith.constant 0 : i32
    %c0_i32_0 = arith.constant 0 : i32
    return %arg0, %c0_i32 : i32, i32
  }
  func.func @transform_2(%arg0: i32) -> (i32, i32) {
    %c0_i32 = arith.constant 0 : i32
    %c0_i32_0 = arith.constant 0 : i32
    %c0_i32_1 = arith.constant 0 : i32
    return %c0_i32, %c0_i32_0 : i32, i32
  }
  func.func @transform_3(%arg0: i32) -> (i32, i32) {
    %c0_i32 = arith.constant 0 : i32
    %c0_i32_0 = arith.constant 0 : i32
    %c0_i32_1 = arith.constant 0 : i32
    return %c0_i32, %c0_i32_0 : i32, i32
  }
  func.func @transform_4(%arg0: i32) -> (i32, i32) {
    %c0_i32 = arith.constant 0 : i32
    %c0_i32_0 = arith.constant 0 : i32
    %c0_i32_1 = arith.constant 0 : i32
    return %c0_i32, %c0_i32_0 : i32, i32
  }
  func.func @transform_5(%arg0: i32) -> (i32, i32) {
    %c0_i32 = arith.constant 0 : i32
    %c0_i32_0 = arith.constant 0 : i32
    %c0_i32_1 = arith.constant 0 : i32
    return %c0_i32, %c0_i32_0 : i32, i32
  }
  func.func @transform_6(%arg0: i32) -> (i32, i32) {
    %c0_i32 = arith.constant 0 : i32
    %c0_i32_0 = arith.constant 0 : i32
    %c0_i32_1 = arith.constant 0 : i32
    return %c0_i32, %c0_i32_0 : i32, i32
  }
  func.func @transform_7(%arg0: i32) -> (i32, i32) {
    %c0_i32 = arith.constant 0 : i32
    %c0_i32_0 = arith.constant 0 : i32
    %c0_i32_1 = arith.constant 0 : i32
    return %c0_i32, %c0_i32_0 : i32, i32
  }
  func.func @transform_8(%arg0: i32) -> (i32, i32) {
    %c0_i32 = arith.constant 0 : i32
    %c0_i32_0 = arith.constant 0 : i32
    %c0_i32_1 = arith.constant 0 : i32
    return %c0_i32, %c0_i32_0 : i32, i32
  }
  func.func @transform_9(%arg0: i32) -> (i32, i32) {
    %c0_i32 = arith.constant 0 : i32
    %c0_i32_0 = arith.constant 0 : i32
    %c0_i32_1 = arith.constant 0 : i32
    return %c0_i32, %c0_i32_0 : i32, i32
  }
  func.func @transform_10(%arg0: i32) -> (i32, i32) {
    %c0_i32 = arith.constant 0 : i32
    %c0_i32_0 = arith.constant 0 : i32
    return %arg0, %c0_i32 : i32, i32
  }
  func.func @transform_11(%arg0: i32) -> (i32, i32) {
    %c0_i32 = arith.constant 0 : i32
    %c0_i32_0 = arith.constant 0 : i32
    return %arg0, %c0_i32 : i32, i32
  }
  func.func @transform_12(%arg0: i32) -> (i32, i32) {
    %c0_i32 = arith.constant 0 : i32
    %c0_i32_0 = arith.constant 0 : i32
    return %arg0, %c0_i32 : i32, i32
  }
}

</mosaic_0001>

<bundles_post_ra>
// kernel: tpu_custom_call.1
= control target key start
LH: loop header
LB: loop body
LE: loop exit
PB: predicated region body
PF: predicated region fallthrough
CT: control target
= control target key end

     0   :  { %18 = vsyncpa [#allocation3], 0  ;;  %s840_s0 = inlined_call_operand.hbm [shape: bf16[8,16], index: 0, kind: input, shape index: {}]   ;;  %s841_s1 = inlined_call_operand.hbm [shape: bf16[8,32], index: 1, kind: input, shape index: {}]   ;;  %s842_s2 = inlined_call_operand.hbm [shape: bf16[16,32], index: 2, kind: input, shape index: {}]   ;;  %s843_s3 = inlined_call_operand.vmem [shape: f32[1,32], index: 3, kind: input, shape index: {}]   ;;  %s844_s4 = inlined_call_operand.hbm [shape: bf16[32,32], index: 4, kind: input, shape index: {}]   ;;  %s845_s5 = inlined_call_operand.vmem [shape: f32[1,32], index: 5, kind: input, shape index: {}]   ;;  %s846_s6 = inlined_call_operand.hbm [shape: bf16[32,32], index: 6, kind: input, shape index: {}]   ;;  %s847_s7 = inlined_call_operand.vmem [shape: f32[1,32], index: 7, kind: input, shape index: {}]   ;;  %s848_s8 = inlined_call_operand.hbm [shape: bf16[32,128], index: 8, kind: input, shape index: {}]   ;;  %s849_s9 = inlined_call_operand.vmem [shape: f32[1,128], index: 9, kind: input, shape index: {}]   ;;  %s850_s10 = inlined_call_operand.hbm [shape: f32[8,32], index: 10, kind: output, shape index: {0}]   ;;  %s851_s11 = inlined_call_operand.hbm [shape: f32[8,128], index: 11, kind: output, shape index: {1}]   ;;  %s852_s12 = inlined_call_operand.hbm [shape: f32[8,128], index: 12, kind: output, shape index: {2}]  }
   0x1   :  { %19 = vsyncpa [#allocation6], 0 }
   0x2   :  { %20 = vsyncpa [#allocation9], 0 }
   0x3   :  { %21 = vsyncpa [#allocation12], 0 }
   0x4   :  { %22 = vsyncpa [#allocation4], 0  ;;  %s40_s23 = sshll.u32 %s841_s1, 4  ;;  %s41_s23 = int_to_ptr.hbm [resolvable:$true] %s40_s23 }
   0x5   :  { %23 = vsyncpa [#allocation15], 0  ;;  %s713_s24 = smov [#allocation5]   ;;  %s65_s28 = sshll.u32 %s844_s4, 4  ;;  %s66_s28 = int_to_ptr.hbm [resolvable:$true] %s65_s28 }
   0x6   :  { %s42_s25 = sshll.u32 %s713_s24, 4  ;;  %s714_s29 = smov [#allocation8]   ;;  %s43_s25 = int_to_ptr.vmem [resolvable:$true] %s42_s25 }
   0x7   :  { %45 = dma.hbm_to_vmem [thread:$0]  %s41_s23, 64, %s43_s25, [#allocation6]  }
   0x8   :  { %s67_s30 = sshll.u32 %s714_s29, 4  ;;  %s29_s15 = sshll.u32 %s840_s0, 4  ;;  %s68_s30 = int_to_ptr.vmem [resolvable:$true] %s67_s30  ;;  %s30_s15 = int_to_ptr.hbm [resolvable:$true] %s29_s15 }
   0x9   :  { %s715_s1 = smov 64   ;;  %s716_s16 = smov 4  }
   0xa   :  { %73 = dma.hbm_to_vmem [thread:$0]  %s66_s28, 256, %s68_s30, [#allocation9], %s715_s1, %s715_s1, %s716_s16  }
   0xb   :  { %s50_s19 = sshll.u32 %s842_s2, 4  ;;  %s717_s20 = smov [#allocation2]   ;;  %s51_s19 = int_to_ptr.hbm [resolvable:$true] %s50_s19 }
   0xc   :  { %s31_s21 = sshll.u32 %s717_s20, 4  ;;  %s718_s4 = smov [#allocation7]   ;;  %s32_s21 = int_to_ptr.vmem [resolvable:$true] %s31_s21 }
   0xd   :  { %34 = dma.hbm_to_vmem [thread:$0]  %s30_s15, 64, %s32_s21, [#allocation3]  }
   0xe   :  { %s52_s22 = sshll.u32 %s718_s4, 4  ;;  %s80_s0 = sshll.u32 %s846_s6, 4  ;;  %s53_s22 = int_to_ptr.vmem [resolvable:$true] %s52_s22  ;;  %s81_s0 = int_to_ptr.hbm [resolvable:$true] %s80_s0 }
   0xf   :  { %58 = dma.hbm_to_vmem [thread:$0]  %s51_s19, 128, %s53_s22, [#allocation6], %s715_s1, %s715_s1, %s716_s16  }
  0x10   :  { %s95_s27 = sshll.u32 %s848_s8, 4  ;;  %s719_s28 = smov [#allocation10]   ;;  %s96_s27 = int_to_ptr.hbm [resolvable:$true] %s95_s27 }
  0x11   :  { %s82_s2 = sshll.u32 %s719_s28, 4  ;;  %s720_s29 = smov [#allocation11]   ;;  %s83_s2 = int_to_ptr.vmem [resolvable:$true] %s82_s2 }
  0x12   :  { %88 = dma.hbm_to_vmem [thread:$0]  %s81_s0, 256, %s83_s2, [#allocation9], %s715_s1, %s715_s1, %s716_s16  }
  0x13   :  { %s97_s30 = sshll.u32 %s720_s29, 4  ;;  %s98_s30 = int_to_ptr.vmem [resolvable:$true] %s97_s30 }
  0x14   :  { %103 = dma.hbm_to_vmem [thread:$0]  %s96_s27, 256, %s98_s30, [#allocation12], %s715_s1, %s715_s1, %s716_s16  }
  0x15   :  { %701 = dma.done.wait [#allocation3], 64  }
  0x16   :  { %702 = vsyncadd [#allocation3], 4294967232 }
  0x17   :  { %703 = dma.done.wait [#allocation6], 192  }
  0x18   :  { %704 = vsyncadd [#allocation6], 4294967104 }
  0x19   :  { %705 = dma.done.wait [#allocation9], 512  }
  0x1a   :  { %706 = vsyncadd [#allocation9], 4294966784 }
  0x1b   :  { %707 = dma.done.wait [#allocation12], 256  }
  0x1c   :  { %708 = vsyncadd [#allocation12], 4294967040  ;;  %v455_v0 = vld [vmem:[#allocation7] sm:$0xff]  ;;  %vm144_vm0 = vcmask 130048   ;;  %v131_v1 = vld [vmem:[#allocation2] sm:$0xf] }
  0x1d   :  { %155 = vmatpush.bf16.msra.mxu0 %v455_v0  ;;  %v457_v2 = vld [vmem:[#allocation8 + $0x8] sm:$0xff]  ;;  %v456_v3 = vld [vmem:[#allocation8] sm:$0xff]  ;;  %v477_v4 = vld [vmem:[%s843_s3] ss:$0 sm:$0xff]  ;;  %vm183_vm1 = vcmask 261120   ;;  %s721_s16 = smov [#allocation13]  }
  0x1e   :  { %193 = vmatpush.bf16.msra.mxu1 %v457_v2  ;;  %v459_v10 = vld [vmem:[#allocation10 + $0x8] sm:$0xff]  ;;  %v458_v12 = vld [vmem:[#allocation10] sm:$0xff]  ;;  %v465_v14 = vld [vmem:[#allocation11 + $0x8] sm:$0xff]  ;;  %s359_s17 = sshll.u32 %s721_s16, 4  ;;  %s361_s20 = sshll.u32 %s850_s10, 4  ;;  %s360_s17 = int_to_ptr.vmem [resolvable:$true] %s359_s17  ;;  %s362_s20 = int_to_ptr.hbm [resolvable:$true] %s361_s20 }
  0x1f   :  { %232 = vmatpush.bf16.msra.mxu2 %v459_v10  ;;  %v463_v11 = vld [vmem:[#allocation10 + $0x8] sm:$0xff]  ;;  %v462_v13 = vld [vmem:[#allocation10] sm:$0xff]  ;;  %v461_v24 = vld [vmem:[#allocation11 + $0x8] sm:$0xff]  ;;  %s722_s23 = smov [#allocation14]   ;;  %s372_s10 = sshll.u32 %s851_s11, 4  ;;  %s373_s10 = int_to_ptr.hbm [resolvable:$true] %s372_s10 }
  0x20   :  { %409 = vmatmul.msk.bf16.vlgmr.msra.gmra.mxu0 %vm144_vm0, %v131_v1  ;;  %v278_v15 = vld [vmem:[#allocation5] sm:$0xf]  ;;  %v478_v16 = vld [vmem:[%s845_s5] ss:$0 sm:$0xff]  ;;  %270 = vmatpush.bf16.msra.mxu3 %v461_v24  ;;  %v464_v26 = vld [vmem:[#allocation11] sm:$0xff]  ;;  %s370_s24 = sshll.u32 %s722_s23, 4  ;;  %s371_s24 = int_to_ptr.vmem [resolvable:$true] %s370_s24 }
  0x21   :  { %308 = vmatpush.bf16.msrb.mxu0 %v463_v11  ;;  %v479_v22 = vld [vmem:[%s847_s7] ss:$0 sm:$0xff]  ;;  %v460_v28 = vld [vmem:[#allocation11] sm:$0xff]  ;;  %s723_s26 = smov [#allocation16]   ;;  %s383_s29 = sshll.u32 %s852_s12, 4  ;;  %s384_s29 = int_to_ptr.hbm [resolvable:$true] %s383_s29 }
  0x22   :  { %194 = vmatpush.bf16.msra.mxu1 %v456_v3  ;;  %v480_v31 = vld [vmem:[%s847_s7] ss:$0 sm:$0xff]  ;;  %s381_s27 = sshll.u32 %s723_s26, 4  ;;  %s382_s27 = int_to_ptr.vmem [resolvable:$true] %s381_s27 }
  0x23   :  { %233 = vmatpush.bf16.msra.mxu2 %v458_v12  ;;  %v481_v37 = vld [vmem:[%s849_s9] ss:$0 sm:$0xff] }
  0x24   :  { %271 = vmatpush.bf16.msra.mxu3 %v460_v28  ;;  %v482_v41 = vld [vmem:[%s849_s9] ss:$0 sm:$0xff] }
  0x25   :  { %309 = vmatpush.bf16.msrb.mxu0 %v462_v13 }
  0x26   :  { %346 = vmatpush.bf16.msrb.mxu1 %v465_v14 }
  0x2a   :  { %347 = vmatpush.bf16.msrb.mxu1 %v464_v26 }
  0x30   :  { %445 = vmatmul.msk.bf16.vlgmr.msrb.gmra.mxu0 %vm183_vm1, %v278_v15 }
  0x9d   :  { %v157_v5 = vpop.f32.mrf.mxu0 }
  0x9e   :  { %v158_v6 = vadd.f32 %v477_v4, %v157_v5 }
  0xa0   :  { %v161_v7 = vmax.f32 %v158_v6, 0.0 }
  0xa2   :  { %v162_v8 = vpack.c.bf16 %v161_v7, %v161_v7 }
  0xa4   :  { %418 = vmatmul.msk.bf16.vlgmr.msra.gmra.mxu1 %vm183_vm1, %v162_v8 }
  0xa5   :  { %v159_v9 = vpop.f32.mrf.mxu0 }
  0xad   :  { %v311_v23 = vpop.f32.mrf.mxu0 }
  0xae   :  { %v312_v25 = vadd.f32 %v479_v22, %v311_v23 }
  0xb0   :  { %v315_v27 = vmax.f32 %v312_v25, 0.0 }
  0xb2   :  { %v316_v29 = vpack.c.bf16 %v315_v27, %v315_v27 }
  0xb4   :  { %454 = vmatmul.msk.bf16.vlgmr.msrb.gmra.mxu1 %vm183_vm1, %v316_v29 }
  0xb5   :  { %v313_v30 = vpop.f32.mrf.mxu0 }
 0x121   :  { %v196_v17 = vpop.f32.mrf.mxu1 }
 0x122   :  { %v197_v18 = vadd.f32 %v478_v16, %v196_v17 }
 0x124   :  { %483 = vtanh.f32 %v197_v18 }
 0x129   :  { %v198_v19 = vpop.f32.mrf.mxu1 }
 0x12a   :  { %v484_v20 = vpop.eup %483 }
 0x12b   :  { %201 = vst.msk [vmem:[#allocation13] sm:$0xff] %vm183_vm1, %v484_v20  ;;  %v202_v21 = vpack.c.bf16 %v484_v20, %v484_v20 }
 0x12c   :  { %364 = dma.vmem_to_hbm [thread:$0]  %s360_s17, 128, %s362_s20, [#allocation4]  }
 0x12d   :  { %427 = vmatmul.msk.bf16.vlgmr.msra.gmra.mxu2 %vm183_vm1, %v202_v21 }
 0x131   :  { %v349_v38 = vpop.f32.mrf.mxu1 }
 0x132   :  { %v350_v39 = vadd.f32 %v481_v37, %v349_v38 }
 0x134   :  { %353 = vst [vmem:[#allocation16] sm:$0xff] %v350_v39 }
 0x139   :  { %v351_v40 = vpop.f32.mrf.mxu1 }
 0x1b0   :  { %v235_v32 = vpop.f32.mrf.mxu2 }
 0x1b1   :  { %v236_v33 = vadd.f32 %v480_v31, %v235_v32 }
 0x1b3   :  { %v239_v34 = vmax.f32 %v236_v33, 0.0 }
 0x1b5   :  { %v240_v35 = vpack.c.bf16 %v239_v34, %v239_v34 }
 0x1b7   :  { %436 = vmatmul.msk.bf16.vlgmr.msra.gmra.mxu3 %vm183_vm1, %v240_v35 }
 0x1b8   :  { %v237_v36 = vpop.f32.mrf.mxu2 }
 0x23a   :  { %v273_v42 = vpop.f32.mrf.mxu3 }
 0x23b   :  { %v274_v43 = vadd.f32 %v482_v41, %v273_v42 }
 0x23d   :  { %277 = vst [vmem:[#allocation14] sm:$0xff] %v274_v43 }
 0x23e   :  { %375 = dma.vmem_to_hbm [thread:$0]  %s371_s24, 128, %s373_s10, [#allocation15]  }
 0x23f   :  { %386 = dma.vmem_to_hbm [thread:$0]  %s382_s27, 128, %s384_s29, [#allocation15]  }
 0x242   :  { %v275_v44 = vpop.f32.mrf.mxu3 }
 0x243   :  { %709 = dma.done.wait [#allocation4], 128  }
 0x244   :  { %710 = vsyncadd [#allocation4], 4294967168 }
 0x245   :  { %711 = dma.done.wait [#allocation15], 256  }
 0x246   :  { %712 = vsyncadd [#allocation15], 4294967040 }
 0x247   :  { %399 = vsyncpa [#allocation3], 1 }
 0x248   :  { %400 = vsyncpa [#allocation6], 1 }
 0x249   :  { %401 = vsyncpa [#allocation9], 1 }
 0x24a   :  { %402 = vsyncpa [#allocation12], 1 }
 0x24b   :  { %403 = vsyncpa [#allocation4], 1 }
 0x24c   :  { %404 = vsyncpa [#allocation15], 1 }

</bundles_post_ra>
